<compile_context>
chip_gen: v6e
topology: v6e:2x2x1
jax: 0.10.0
libtpu: 0.0.40
codegen_flags: <defaults>
</compile_context>

<pallas_src>
import functools

import jax
import jax.numpy as jnp
from jax.experimental import pallas as pl
from jax.experimental.pallas import tpu as pltpu

_LANE = 128      # hidden matmul N dims stay lane-dense (multiple of 128)
_SUBLANE = 8     # f32 sublane packing: batch tiles are multiples of 8


def _round_up(x, m):
    return (x + m - 1) // m * m


def _q_mlp_kernel(x_ref, w1_ref, b1_ref, w2_ref, b2_ref, w3_ref, b3_ref, o_ref):
    """Fused 3-layer MLP on one batch tile.

    Matmuls run on the MXU in the weights' dtype (bf16 by default) with f32
    accumulation; bias add + ReLU stay in f32 on the VPU.  Only the A real
    output columns are written back (o_ref last dim == action_dim).
    """
    # In-kernel cast: activation arrives as f32 from HBM (no extra wrapper
    # pass); cast to the MXU operand dtype here.
    x = x_ref[...].astype(w1_ref.dtype)                              # [tb, S]
    h = jnp.dot(x, w1_ref[...], preferred_element_type=jnp.float32)  # [tb, H1p]
    h = jnp.maximum(h + b1_ref[...], 0.0)
    h = jnp.dot(h.astype(w2_ref.dtype), w2_ref[...],
                preferred_element_type=jnp.float32)                  # [tb, H2p]
    h = jnp.maximum(h + b2_ref[...], 0.0)
    h = jnp.dot(h.astype(w3_ref.dtype), w3_ref[...],
                preferred_element_type=jnp.float32)                  # [tb, Ap]
    a = o_ref.shape[-1]                                              # real A
    o_ref[...] = (h[:, :a] + b3_ref[...]).astype(o_ref.dtype)        # [tb, A]


def prepare_params(params, compute_dtype=jnp.bfloat16):
    """One-time packing of PyTorch-layout params for the kernel.

    - transpose weights (out, in) -> (in, out) so the kernel does x @ W
    - zero-pad hidden widths (and matching K dims) to multiples of 128 so the
      intermediate matmul N dims are lane-dense; the final N stays padded for
      a clean MXU shape but only A columns are stored
    - cast weights to the MXU compute dtype; keep biases in f32
    - b3 is kept UNPADDED (1, A) so the output store is exactly A wide
    Zero-padding is exact because padded activations are 0 after bias(0)+ReLU
    and hit zero weight rows in the next layer.  (Do NOT introduce a non-zero
    bias pad or a non-ReLU activation without revisiting this.)
    """
    def pack_w(w, k_pad, n_pad):
        out_d, in_d = w.shape
        wt = jnp.zeros((k_pad, n_pad), jnp.float32).at[:in_d, :out_d].set(w.T)
        return wt.astype(compute_dtype)

    def pack_b(b, n_pad):
        return jnp.zeros((1, n_pad), jnp.float32).at[:, :b.shape[0]].set(b)

    s = params["w1"].shape[1]
    h1, h2, a = params["w1"].shape[0], params["w2"].shape[0], params["w3"].shape[0]
    h1p, h2p, ap = _round_up(h1, _LANE), _round_up(h2, _LANE), _round_up(a, _LANE)
    return {
        "w1": pack_w(params["w1"], s, h1p), "b1": pack_b(params["b1"], h1p),
        "w2": pack_w(params["w2"], h1p, h2p), "b2": pack_b(params["b2"], h2p),
        "w3": pack_w(params["w3"], h2p, ap), "b3": pack_b(params["b3"], a),
    }


def _choose_batch_tiles(B, block_b):
    """Pick (tile_b, b_pad): sublane-multiple tile, minimal padding waste,
    and >=2 grid steps whenever possible so v7x's 2 TensorCores both run."""
    b_pad = _round_up(B, _SUBLANE)
    block_b = max(int(block_b), _SUBLANE)
    n_steps = max(1, -(-b_pad // block_b))
    if b_pad >= 2 * _SUBLANE:
        n_steps = max(n_steps, 2)
    tile_b = _round_up(-(-b_pad // n_steps), _SUBLANE)
    b_pad = _round_up(b_pad, tile_b)
    return tile_b, b_pad


@functools.partial(jax.jit, static_argnames=("action_dim", "block_b"))
def q_network_forward(state_batch, prepared, action_dim, block_b=2048):
    """state_batch: [B, state_size] f32; prepared: output of prepare_params."""
    B, S = state_batch.shape
    h1_pad = prepared["w1"].shape[1]
    h2_pad = prepared["w2"].shape[1]
    a_pad = prepared["w3"].shape[1]

    tile_b, b_pad = _choose_batch_tiles(B, block_b)

    x = state_batch  # stays f32 — cast happens inside the kernel.
    if b_pad != B:
        # Only pay the pad pass when B isn't already tile-aligned.
        x = jnp.pad(x, ((0, b_pad - B), (0, 0)))

    grid = (b_pad // tile_b,)

    flops = 2 * b_pad * (S * h1_pad + h1_pad * h2_pad + h2_pad * a_pad)
    bytes_accessed = (
        x.size * x.dtype.itemsize
        + sum(v.size * v.dtype.itemsize for v in prepared.values())
        + b_pad * action_dim * 4)
    cost = pl.CostEstimate(flops=flops, transcendentals=0,
                           bytes_accessed=bytes_accessed)

    # Weights/biases: full-array blocks with constant index_map -> DMA'd once,
    # resident in VMEM across the whole batch grid.
    resident = lambda arr: pl.BlockSpec(arr.shape, lambda i: (0, 0))

    out = pl.pallas_call(
        _q_mlp_kernel,
        # Narrow output: last dim == action_dim (full array dim, <128 allowed).
        out_shape=jax.ShapeDtypeStruct((b_pad, action_dim), jnp.float32),
        grid=grid,
        in_specs=[
            pl.BlockSpec((tile_b, S), lambda i: (i, 0)),
            resident(prepared["w1"]), resident(prepared["b1"]),
            resident(prepared["w2"]), resident(prepared["b2"]),
            resident(prepared["w3"]), resident(prepared["b3"]),
        ],
        out_specs=pl.BlockSpec((tile_b, action_dim), lambda i: (i, 0)),
        compiler_params=pltpu.CompilerParams(
            dimension_semantics=("parallel",),   # megacore / 2-TC batch split
            vmem_limit_bytes=32 << 20,           # safe headroom on v7x (64 MiB)
        ),
        cost_estimate=cost,
    )(x, prepared["w1"], prepared["b1"], prepared["w2"], prepared["b2"],
      prepared["w3"], prepared["b3"])

    if b_pad != B:
        out = out[:B]
    return out


def init_params(key, state_size, action_space_size):
    """Deterministic init mimicking nn.Linear (uniform +/- 1/sqrt(fan_in))."""
    dims = [
        (3 * state_size, state_size),         # linear_1 weight (out, in)
        (2 * state_size, 3 * state_size),     # linear_2
        (action_space_size, 2 * state_size),  # linear_3
    ]
    params = {}
    for idx, (out_d, in_d) in enumerate(dims, start=1):
        key, kw, kb = jax.random.split(key, 3)
        bound = 1.0 / jnp.sqrt(in_d)
        params[f"w{idx}"] = jax.random.uniform(
            kw, (out_d, in_d), jnp.float32, -bound, bound)
        params[f"b{idx}"] = jax.random.uniform(
            kb, (out_d,), jnp.float32, -bound, bound)
    return params


def reference_forward(state_batch, params):
    # Matches PyTorch forward: relu(l1), relu(l2), l3 (no softmax applied).
    h = jnp.maximum(state_batch @ params["w1"].T + params["b1"], 0.0)
    h = jnp.maximum(h @ params["w2"].T + params["b2"], 0.0)
    return h @ params["w3"].T + params["b3"]


if __name__ == "__main__":
    key = jax.random.PRNGKey(0)
    batch = 8
    state_size = 32
    action_space_size = 8

    k_x, k_p = jax.random.split(key)
    state_batch = jax.random.normal(k_x, (batch, state_size), jnp.float32)
    params = init_params(k_p, state_size, action_space_size)
    ref = reference_forward(state_batch, params)

    # Default fast path: bf16 MXU operands, f32 accumulation, f32 activations.
    prep_bf16 = prepare_params(params, compute_dtype=jnp.bfloat16)
    out_bf16 = jax.block_until_ready(
        q_network_forward(state_batch, prep_bf16, action_space_size))
    assert out_bf16.shape == (batch, action_space_size)
    assert jnp.allclose(out_bf16, ref, atol=5e-2, rtol=5e-2), "bf16 mismatch"

    # Full-precision path: tight check of the fused kernel itself.
    prep_f32 = prepare_params(params, compute_dtype=jnp.float32)
    out_f32 = jax.block_until_ready(
        q_network_forward(state_batch, prep_f32, action_space_size))
    assert out_f32.shape == (batch, action_space_size)
    assert jnp.allclose(out_f32, ref, atol=1e-4, rtol=1e-4), "f32 mismatch"

    # Non-aligned / larger batch to exercise the multi-step grid + row padding.
    k_x2 = jax.random.PRNGKey(7)
    big_batch = 300
    sb2 = jax.random.normal(k_x2, (big_batch, state_size), jnp.float32)
    out2 = jax.block_until_ready(
        q_network_forward(sb2, prep_f32, action_space_size))
    assert out2.shape == (big_batch, action_space_size)
    assert jnp.allclose(out2, reference_forward(sb2, params),
                        atol=1e-4, rtol=1e-4), "f32 big-batch mismatch"

    print("KERNEL_OK")
</pallas_src>

<mosaic_0001>
module attributes {stable_mosaic.version = 11 : i64} {
  func.func @_q_mlp_kernel(%arg0: i32, %arg1: memref<8x32xf32, #tpu.memory_space<vmem>>, %arg2: memref<32x128xbf16, #tpu.memory_space<vmem>>, %arg3: memref<1x128xf32, #tpu.memory_space<vmem>>, %arg4: memref<128x128xbf16, #tpu.memory_space<vmem>>, %arg5: memref<1x128xf32, #tpu.memory_space<vmem>>, %arg6: memref<128x128xbf16, #tpu.memory_space<vmem>>, %arg7: memref<1x8xf32, #tpu.memory_space<vmem>>, %arg8: memref<8x8xf32, #tpu.memory_space<vmem>>) attributes {dimension_semantics = [#tpu.dimension_semantics<parallel>], iteration_bounds = array<i64: 1>, scalar_prefetch = 0 : i64, scratch_operands = 0 : i64, tpu.core_type = #tpu.core_type<tc>, window_params = [{transform_indices = @transform_0, window_bounds = array<i64: 8, 32>}, {pipeline_mode = #tpu.pipeline_mode<synchronous>, transform_indices = @transform_1, window_bounds = array<i64: 32, 128>}, {pipeline_mode = #tpu.pipeline_mode<synchronous>, transform_indices = @transform_2, window_bounds = array<i64: 1, 128>}, {pipeline_mode = #tpu.pipeline_mode<synchronous>, transform_indices = @transform_3, window_bounds = array<i64: 128, 128>}, {pipeline_mode = #tpu.pipeline_mode<synchronous>, transform_indices = @transform_4, window_bounds = array<i64: 1, 128>}, {pipeline_mode = #tpu.pipeline_mode<synchronous>, transform_indices = @transform_5, window_bounds = array<i64: 128, 128>}, {pipeline_mode = #tpu.pipeline_mode<synchronous>, transform_indices = @transform_6, window_bounds = array<i64: 1, 8>}, {transform_indices = @transform_7, window_bounds = array<i64: 8, 8>}]} {
    %c0 = arith.constant 0 : index
    %c0_0 = arith.constant 0 : index
    %0 = vector.load %arg1[%c0, %c0_0] : memref<8x32xf32, #tpu.memory_space<vmem>>, vector<8x32xf32>
    %1 = arith.truncf %0 : vector<8x32xf32> to vector<8x32xbf16>
    %c0_1 = arith.constant 0 : index
    %c0_2 = arith.constant 0 : index
    %2 = vector.load %arg2[%c0_1, %c0_2] : memref<32x128xbf16, #tpu.memory_space<vmem>>, vector<32x128xbf16>
    %cst = arith.constant dense<0.000000e+00> : vector<8x128xf32>
    %3 = tpu.matmul %1, %2, %cst {dimension_numbers = #tpu.dot_dimension_numbers<[1], [0], [0], [1], [0, 0, 1, 1], [], []>} : vector<8x32xbf16>, vector<32x128xbf16>, vector<8x128xf32> -> vector<8x128xf32>
    %c0_3 = arith.constant 0 : index
    %c0_4 = arith.constant 0 : index
    %4 = vector.load %arg3[%c0_3, %c0_4] : memref<1x128xf32, #tpu.memory_space<vmem>>, vector<1x128xf32>
    %5 = vector.broadcast %4 : vector<1x128xf32> to vector<8x128xf32>
    %6 = arith.addf %3, %5 : vector<8x128xf32>
    %cst_5 = arith.constant 0.000000e+00 : f32
    %7 = vector.broadcast %cst_5 : f32 to vector<8x128xf32>
    %8 = arith.maximumf %6, %7 : vector<8x128xf32>
    %9 = arith.truncf %8 : vector<8x128xf32> to vector<8x128xbf16>
    %c0_6 = arith.constant 0 : index
    %c0_7 = arith.constant 0 : index
    %10 = vector.load %arg4[%c0_6, %c0_7] : memref<128x128xbf16, #tpu.memory_space<vmem>>, vector<128x128xbf16>
    %cst_8 = arith.constant dense<0.000000e+00> : vector<8x128xf32>
    %11 = tpu.matmul %9, %10, %cst_8 {dimension_numbers = #tpu.dot_dimension_numbers<[1], [0], [0], [1], [0, 0, 1, 1], [], []>} : vector<8x128xbf16>, vector<128x128xbf16>, vector<8x128xf32> -> vector<8x128xf32>
    %c0_9 = arith.constant 0 : index
    %c0_10 = arith.constant 0 : index
    %12 = vector.load %arg5[%c0_9, %c0_10] : memref<1x128xf32, #tpu.memory_space<vmem>>, vector<1x128xf32>
    %13 = vector.broadcast %12 : vector<1x128xf32> to vector<8x128xf32>
    %14 = arith.addf %11, %13 : vector<8x128xf32>
    %cst_11 = arith.constant 0.000000e+00 : f32
    %15 = vector.broadcast %cst_11 : f32 to vector<8x128xf32>
    %16 = arith.maximumf %14, %15 : vector<8x128xf32>
    %17 = arith.truncf %16 : vector<8x128xf32> to vector<8x128xbf16>
    %c0_12 = arith.constant 0 : index
    %c0_13 = arith.constant 0 : index
    %18 = vector.load %arg6[%c0_12, %c0_13] : memref<128x128xbf16, #tpu.memory_space<vmem>>, vector<128x128xbf16>
    %cst_14 = arith.constant dense<0.000000e+00> : vector<8x128xf32>
    %19 = tpu.matmul %17, %18, %cst_14 {dimension_numbers = #tpu.dot_dimension_numbers<[1], [0], [0], [1], [0, 0, 1, 1], [], []>} : vector<8x128xbf16>, vector<128x128xbf16>, vector<8x128xf32> -> vector<8x128xf32>
    %20 = vector.extract_strided_slice %19 {offsets = [0, 0], sizes = [8, 8], strides = [1, 1]} : vector<8x128xf32> to vector<8x8xf32>
    %c0_15 = arith.constant 0 : index
    %c0_16 = arith.constant 0 : index
    %21 = vector.load %arg7[%c0_15, %c0_16] : memref<1x8xf32, #tpu.memory_space<vmem>>, vector<1x8xf32>
    %22 = vector.broadcast %21 : vector<1x8xf32> to vector<8x8xf32>
    %23 = arith.addf %20, %22 : vector<8x8xf32>
    %c0_17 = arith.constant 0 : index
    %c0_18 = arith.constant 0 : index
    %24 = vector.load %arg8[%c0_17, %c0_18] : memref<8x8xf32, #tpu.memory_space<vmem>>, vector<8x8xf32>
    tpu.vector_store %arg8[%c0_17, %c0_18], %23 {strides = array<i32>} : memref<8x8xf32, #tpu.memory_space<vmem>>, vector<8x8xf32>,
    return
  }
  func.func @transform_0(%arg0: i32) -> (i32, i32) {
    %c0_i32 = arith.constant 0 : i32
    %c0_i32_0 = arith.constant 0 : i32
    return %arg0, %c0_i32 : i32, i32
  }
  func.func @transform_1(%arg0: i32) -> (i32, i32) {
    %c0_i32 = arith.constant 0 : i32
    %c0_i32_0 = arith.constant 0 : i32
    %c0_i32_1 = arith.constant 0 : i32
    return %c0_i32, %c0_i32_0 : i32, i32
  }
  func.func @transform_2(%arg0: i32) -> (i32, i32) {
    %c0_i32 = arith.constant 0 : i32
    %c0_i32_0 = arith.constant 0 : i32
    %c0_i32_1 = arith.constant 0 : i32
    return %c0_i32, %c0_i32_0 : i32, i32
  }
  func.func @transform_3(%arg0: i32) -> (i32, i32) {
    %c0_i32 = arith.constant 0 : i32
    %c0_i32_0 = arith.constant 0 : i32
    %c0_i32_1 = arith.constant 0 : i32
    return %c0_i32, %c0_i32_0 : i32, i32
  }
  func.func @transform_4(%arg0: i32) -> (i32, i32) {
    %c0_i32 = arith.constant 0 : i32
    %c0_i32_0 = arith.constant 0 : i32
    %c0_i32_1 = arith.constant 0 : i32
    return %c0_i32, %c0_i32_0 : i32, i32
  }
  func.func @transform_5(%arg0: i32) -> (i32, i32) {
    %c0_i32 = arith.constant 0 : i32
    %c0_i32_0 = arith.constant 0 : i32
    %c0_i32_1 = arith.constant 0 : i32
    return %c0_i32, %c0_i32_0 : i32, i32
  }
  func.func @transform_6(%arg0: i32) -> (i32, i32) {
    %c0_i32 = arith.constant 0 : i32
    %c0_i32_0 = arith.constant 0 : i32
    %c0_i32_1 = arith.constant 0 : i32
    return %c0_i32, %c0_i32_0 : i32, i32
  }
  func.func @transform_7(%arg0: i32) -> (i32, i32) {
    %c0_i32 = arith.constant 0 : i32
    %c0_i32_0 = arith.constant 0 : i32
    return %arg0, %c0_i32 : i32, i32
  }
}

</mosaic_0001>

<bundles_post_ra>
// kernel: q_network_forward.1
= control target key start
LH: loop header
LB: loop body
LE: loop exit
PB: predicated region body
PF: predicated region fallthrough
CT: control target
= control target key end

     0   :  { %12 = vsyncpa [#allocation3], 0  ;;  %s728_s0 = inlined_call_operand.hbm [shape: f32[8,32], index: 0, kind: input, shape index: {}]   ;;  %s729_s1 = inlined_call_operand.hbm [shape: bf16[32,128], index: 1, kind: input, shape index: {}]   ;;  %s730_s2 = inlined_call_operand.vmem [shape: f32[1,128], index: 2, kind: input, shape index: {}]   ;;  %s731_s3 = inlined_call_operand.hbm [shape: bf16[128,128], index: 3, kind: input, shape index: {}]   ;;  %s732_s4 = inlined_call_operand.vmem [shape: f32[1,128], index: 4, kind: input, shape index: {}]   ;;  %s733_s5 = inlined_call_operand.hbm [shape: bf16[128,128], index: 5, kind: input, shape index: {}]   ;;  %s734_s6 = inlined_call_operand.vmem [shape: f32[1,8], index: 6, kind: input, shape index: {}]   ;;  %s735_s7 = inlined_call_operand.hbm [shape: f32[8,8], index: 7, kind: output, shape index: {}]  }
   0x1   :  { %13 = vsyncpa [#allocation6], 0 }
   0x2   :  { %14 = vsyncpa [#allocation9], 0 }
   0x3   :  { %15 = vsyncpa [#allocation4], 0  ;;  %s622_s24 = smov [#allocation5]  }
   0x4   :  { %s31_s25 = sshll.u32 %s622_s24, 4  ;;  %s32_s25 = int_to_ptr.vmem [resolvable:$true] %s31_s25 }
   0x5   :  { %s522_s26 = scalar_lea.vmem %s32_s25, 256  ;;  %p527_p1 = scmp.lt.s32.totalorder %s32_s25, %s32_s25 }
   0x6   :  { %p523_p0 = scmp.ne.s32.totalorder %s32_s25, %s522_s26  ;;  %p528_p2 = scmp.lt.s32.totalorder %s522_s26, %s522_s26 }
   0x8   :  { %p529_p3 = por %p528_p2, %p527_p1 }
   0xa   :  { %p530_p4 = pnand %p529_p3, %p523_p0 }
   0xc   :  { %533 = shalt.err (!%p530_p4)
}
   0xd   :  { %s623_s27 = smov 64   ;;  %s624_s28 = smov 4  }
   0xe   :  { %37 = dma.hbm_to_vmem [thread:$0]  %s729_s1, 256, %s32_s25, [#allocation6], %s623_s27, %s623_s27, %s624_s28  }
   0xf   :  { %s625_s8 = smov [#allocation2]   ;;  %s626_s10 = smov [#allocation7]  }
  0x10   :  { %s22_s9 = sshll.u32 %s625_s8, 4  ;;  %s45_s11 = sshll.u32 %s626_s10, 4  ;;  %s23_s9 = int_to_ptr.vmem [resolvable:$true] %s22_s9  ;;  %s46_s11 = int_to_ptr.vmem [resolvable:$true] %s45_s11 }
  0x11   :  { %s542_s12 = scalar_lea.vmem %s23_s9, 128  ;;  %p547_p6 = scmp.lt.s32.totalorder %s23_s9, %s23_s9 }
  0x12   :  { %p543_p5 = scmp.ne.s32.totalorder %s23_s9, %s542_s12  ;;  %p548_p7 = scmp.lt.s32.totalorder %s542_s12, %s542_s12 }
  0x14   :  { %p549_p8 = por %p548_p7, %p547_p6 }
  0x16   :  { %p550_p9 = pnand %p549_p8, %p543_p5 }
  0x18   :  { %553 = shalt.err (!%p550_p9)
}
  0x19   :  { %25 = dma.hbm_to_vmem [thread:$0]  %s728_s0, 128, %s23_s9, [#allocation3]  }
  0x1a   :  { %s562_s15 = scalar_lea.vmem %s46_s11, 1024  ;;  %p567_p11 = scmp.lt.s32.totalorder %s46_s11, %s46_s11 }
  0x1b   :  { %p563_p10 = scmp.ne.s32.totalorder %s46_s11, %s562_s15  ;;  %p568_p12 = scmp.lt.s32.totalorder %s562_s15, %s562_s15 }
  0x1d   :  { %p569_p13 = por %p568_p12, %p567_p11 }
  0x1f   :  { %p570_p0 = pnand %p569_p13, %p563_p10 }
  0x21   :  { %573 = shalt.err (!%p570_p0)
}
  0x22   :  { %51 = dma.hbm_to_vmem [thread:$0]  %s731_s3, 1024, %s46_s11, [#allocation6], %s623_s27, %s623_s27, %s624_s28  }
  0x23   :  { %s627_s17 = smov [#allocation8]  }
  0x24   :  { %s59_s18 = sshll.u32 %s627_s17, 4  ;;  %s60_s18 = int_to_ptr.vmem [resolvable:$true] %s59_s18 }
  0x25   :  { %s582_s19 = scalar_lea.vmem %s60_s18, 1024  ;;  %p587_p2 = scmp.lt.s32.totalorder %s60_s18, %s60_s18 }
  0x26   :  { %p583_p1 = scmp.ne.s32.totalorder %s60_s18, %s582_s19  ;;  %p588_p3 = scmp.lt.s32.totalorder %s582_s19, %s582_s19 }
  0x28   :  { %p589_p4 = por %p588_p3, %p587_p2 }
  0x2a   :  { %p590_p5 = pnand %p589_p4, %p583_p1 }
  0x2c   :  { %593 = shalt.err (!%p590_p5)
}
  0x2d   :  { %65 = dma.hbm_to_vmem [thread:$0]  %s733_s5, 1024, %s60_s18, [#allocation9], %s623_s27, %s623_s27, %s624_s28  }
  0x2e   :  { %614 = dma.done.wait [#allocation3], 128  }
  0x2f   :  { %615 = vsyncadd [#allocation3], 4294967168 }
  0x30   :  { %616 = dma.done.wait [#allocation6], 1280  }
  0x31   :  { %617 = vsyncadd [#allocation6], 4294966016 }
  0x32   :  { %618 = dma.done.wait [#allocation9], 1024  }
  0x33   :  { %619 = vsyncadd [#allocation9], 4294966272  ;;  %v628_v0 = vmov 0.0   ;;  %vm629_vm0 = vmmov 0   ;;  %v496_v1 = vld [vmem:[#allocation5 + $0x8] sm:$0xff]   ;;  %v497_v2 = vld [vmem:[#allocation5] sm:$0xff]  }
  0x34   :  { %439 = vmatprep.subr.bf16.mxu0 %v628_v0  ;;  %443 = vmatprep.mubr.msk.bf16.mxu0 %vm629_vm0, %v628_v0  ;;  %v81_v3 = vld [vmem:[#allocation2] sm:$0xff]  ;;  %v498_v4 = vld [vmem:[#allocation7 + $0x38] sm:$0xff]   ;;  %v499_v6 = vld [vmem:[#allocation7 + $0x30] sm:$0xff]   ;;  %vm106_vm1 = vcmask 261120   ;;  %s630_s24 = smov [#allocation10]   ;;  %vm377_vm2 = vcmask 64512  }
  0x35   :  { %447 = vmatprep.subr.bf16.mxu1 %v628_v0  ;;  %463 = vmatprep.mubr.msk.bf16.mxu1 %vm629_vm0, %v628_v0  ;;  %v82_v5 = vpack.c.bf16 %v81_v3, %v81_v3  ;;  %v500_v7 = vld [vmem:[#allocation7 + $0x28] sm:$0xff]   ;;  %v501_v8 = vld [vmem:[#allocation7 + $0x20] sm:$0xff]   ;;  %v502_v9 = vld [vmem:[#allocation7 + $0x18] sm:$0xff]   ;;  %s385_s25 = sshll.u32 %s630_s24, 4  ;;  %s386_s25 = int_to_ptr.vmem [resolvable:$true] %s385_s25 }
  0x36   :  { %440 = vmatpush3.bf16.msra.mxu0 %v496_v1  ;;  %448 = vmatpush3.bf16.msra.mxu1 %v498_v4  ;;  %v503_v10 = vld [vmem:[#allocation7 + $0x10] sm:$0xff]   ;;  %v504_v11 = vld [vmem:[#allocation7 + $0x8] sm:$0xff]   ;;  %v505_v12 = vld [vmem:[#allocation7] sm:$0xff]   ;;  %p599_p7 = scmp.lt.s32.totalorder %s386_s25, %s386_s25 }
  0x37   :  { %441 = vmatprep.subr.bf16.mxu0 %v628_v0  ;;  %449 = vmatprep.subr.bf16.mxu1 %v628_v0  ;;  %v506_v13 = vld [vmem:[#allocation8 + $0x38] sm:$0xff]   ;;  %v507_v14 = vld [vmem:[#allocation8 + $0x30] sm:$0xff]   ;;  %v508_v15 = vld [vmem:[#allocation8 + $0x28] sm:$0xff]  }
  0x38   :  { %v509_v16 = vld [vmem:[#allocation8 + $0x20] sm:$0xff]   ;;  %v510_v17 = vld [vmem:[#allocation8 + $0x18] sm:$0xff]   ;;  %v511_v18 = vld [vmem:[#allocation8 + $0x10] sm:$0xff]  }
  0x39   :  { %v396_v19 = vld [vmem:[%s730_s2] ss:$0 sm:$0xff]  ;;  %v513_v28 = vld [vmem:[#allocation8] sm:$0xff]  }
  0x3a   :  { %442 = vmatpush3.bf16.msra.mxu0 %v497_v2  ;;  %450 = vmatpush3.bf16.msra.mxu1 %v499_v6  ;;  %v512_v27 = vld [vmem:[#allocation8 + $0x8] sm:$0xff]  }
  0x3b   :  { %467 = vmatprep.subr.bf16.mxu0 %v628_v0  ;;  %451 = vmatprep.subr.bf16.mxu1 %v628_v0  ;;  %v400_v29 = vld [vmem:[%s732_s4] ss:$0 sm:$0xff]  ;;  %s594_s4 = scalar_lea.vmem %s386_s25, 128 }
  0x3c   :  { %v417_v37 = vld [vmem:[%s734_s6] ss:$0 sm:$0xff]  ;;  %p595_p6 = scmp.ne.s32.totalorder %s386_s25, %s594_s4  ;;  %p600_p8 = scmp.lt.s32.totalorder %s594_s4, %s594_s4 }
  0x3d   :  { %444 = vmatmul.mubr.msk.bf16.vlgmr.msra.gmra.mxu0 %vm106_vm1, %v82_v5 }
  0x3e   :  { %483 = vmatprep.mubr.msk.bf16.mxu0 %vm629_vm0, %v628_v0  ;;  %452 = vmatpush3.bf16.msra.mxu1 %v500_v7  ;;  %p601_p9 = por %p600_p8, %p599_p7 }
  0x3f   :  { %453 = vmatprep.subr.bf16.mxu1 %v628_v0  ;;  %468 = vmatpush3.bf16.msra.mxu0 %v506_v13 }
  0x40   :  { %469 = vmatprep.subr.bf16.mxu0 %v628_v0  ;;  %p602_p10 = pnand %p601_p9, %p595_p6 }
  0x42   :  { %454 = vmatpush3.bf16.msra.mxu1 %v501_v8 }
  0x43   :  { %455 = vmatprep.subr.bf16.mxu1 %v628_v0  ;;  %470 = vmatpush3.bf16.msra.mxu0 %v507_v14 }
  0x44   :  { %471 = vmatprep.subr.bf16.mxu0 %v628_v0 }
  0x46   :  { %456 = vmatpush3.bf16.msra.mxu1 %v502_v9 }
  0x47   :  { %457 = vmatprep.subr.bf16.mxu1 %v628_v0  ;;  %472 = vmatpush3.bf16.msra.mxu0 %v508_v15 }
  0x48   :  { %473 = vmatprep.subr.bf16.mxu0 %v628_v0 }
  0x4a   :  { %458 = vmatpush3.bf16.msra.mxu1 %v503_v10 }
  0x4b   :  { %459 = vmatprep.subr.bf16.mxu1 %v628_v0  ;;  %474 = vmatpush3.bf16.msra.mxu0 %v509_v16 }
  0x4c   :  { %475 = vmatprep.subr.bf16.mxu0 %v628_v0 }
  0x4e   :  { %460 = vmatpush3.bf16.msra.mxu1 %v504_v11 }
  0x4f   :  { %461 = vmatprep.subr.bf16.mxu1 %v628_v0  ;;  %476 = vmatpush3.bf16.msra.mxu0 %v510_v17 }
  0x50   :  { %477 = vmatprep.subr.bf16.mxu0 %v628_v0 }
  0x52   :  { %462 = vmatpush3.bf16.msra.mxu1 %v505_v12 }
  0x53   :  { %478 = vmatpush3.bf16.msra.mxu0 %v511_v18 }
  0x54   :  { %479 = vmatprep.subr.bf16.mxu0 %v628_v0 }
  0x57   :  { %480 = vmatpush3.bf16.msra.mxu0 %v512_v27 }
  0x58   :  { %481 = vmatprep.subr.bf16.mxu0 %v628_v0 }
  0x5b   :  { %482 = vmatpush3.bf16.msra.mxu0 %v513_v28 }
  0xfd   :  { %v144_v20 = vpop.f32.mrf.mxu0 }
  0xfe   :  { %v145_v21 = vadd.f32 %v396_v19, %v144_v20 }
  0xff   :  { %v445_v22 = vpop.f32.mrf.mxu0 }
 0x100   :  { %v150_v23 = vmax.f32 %v145_v21, 0.0 }
 0x101   :  { %v147_v24 = vpop.f32.mrf.mxu0 }
 0x102   :  { %v151_v25 = vpack.c.bf16 %v150_v23, %v150_v23 }
 0x103   :  { %v446_v26 = vpop.f32.mrf.mxu0 }
 0x104   :  { %464 = vmatmul.mubr.bf16.vlgmr.msra.gmra.mxu1 %v151_v25 }
 0x1c4   :  { %v257_v30 = vpop.f32.mrf.mxu1 }
 0x1c5   :  { %v258_v31 = vadd.f32 %v400_v29, %v257_v30 }
 0x1c6   :  { %v465_v32 = vpop.f32.mrf.mxu1 }
 0x1c7   :  { %v263_v33 = vmax.f32 %v258_v31, 0.0 }
 0x1c8   :  { %v260_v34 = vpop.f32.mrf.mxu1 }
 0x1c9   :  { %v264_v35 = vpack.c.bf16 %v263_v33, %v263_v33 }
 0x1ca   :  { %v466_v36 = vpop.f32.mrf.mxu1 }
 0x1cb   :  { %484 = vmatmul.mubr.bf16.vlgmr.msra.gmra.mxu0 %v264_v35 }
 0x28b   :  { %v363_v38 = vpop.f32.mrf.mxu0 }
 0x28c   :  { %v376_v39 = vadd.f32 %v417_v37, %v363_v38 }
 0x28d   :  { %v485_v40 = vpop.f32.mrf.mxu0 }
 0x28e   :  { %378 = vst.msk [vmem:[#allocation10] sm:$0xff] %vm377_vm2, %v376_v39 }
 0x28f   :  { %v366_v41 = vpop.f32.mrf.mxu0 }
 0x290   :  { %605 = shalt.err (!%p602_p10)
}
 0x291   :  { %388 = dma.vmem_to_hbm [thread:$0]  %s386_s25, 128, %s735_s7, [#allocation4]   ;;  %v486_v42 = vpop.f32.mrf.mxu0 }
 0x292   :  { %620 = dma.done.wait [#allocation4], 128  }
 0x293   :  { %621 = vsyncadd [#allocation4], 4294967168 }
 0x294   :  { %392 = vsyncpa [#allocation3], 1 }
 0x295   :  { %393 = vsyncpa [#allocation6], 1 }
 0x296   :  { %394 = vsyncpa [#allocation9], 1 }
 0x297   :  { %395 = vsyncpa [#allocation4], 1 }

</bundles_post_ra>
